<compile_context>
chip_gen: v7x
topology: tpu7x:2x2x1
jax: 0.10.0
libtpu: 0.0.40
codegen_flags: <defaults>
</compile_context>

<pallas_src>
import jax
import jax.numpy as jnp
import numpy as np
from jax.experimental import pallas as pl
from jax.experimental.pallas import tpu as pltpu


# ----------------------------- kernels --------------------------------------


def _fused_small_kernel(seq_ref, wT_ref, adj_ref, out_ref):
    # Everything fits in VMEM: one grid-less invocation, no per-step overhead.
    fts = jnp.dot(seq_ref[...], wT_ref[...], preferred_element_type=jnp.float32)
    out_ref[...] = jnp.dot(
        adj_ref[...], fts.astype(adj_ref.dtype), preferred_element_type=jnp.float32
    ).astype(out_ref.dtype)


def _project_kernel(seq_ref, wT_ref, fts_ref):
    # fts row-tile = seq row-tile @ W^T   (weight pre-transposed in the wrapper).
    fts_ref[...] = jnp.dot(
        seq_ref[...], wT_ref[...], preferred_element_type=jnp.float32
    ).astype(fts_ref.dtype)


def _make_spmm_kernel(n_cols, tk, mask_cols, fts_resident):
    """out row-tile = sum_k adj(i, k-tile) @ fts(k-tile, :), accumulated in out_ref."""

    def kernel(adj_ref, fts_ref, out_ref):
        k = pl.program_id(1)

        a = adj_ref[...]
        if mask_cols:
            # Ragged K tail: zero the out-of-range adj columns (only emitted when
            # N % tk != 0).  The matching fts rows are already zero (seq was
            # zero-padded), this just guards against non-finite garbage in the
            # boundary block.
            col = k * tk + jax.lax.broadcasted_iota(jnp.int32, a.shape, 1)
            a = jnp.where(col < n_cols, a, jnp.zeros_like(a))

        if fts_resident:
            # fts lives whole in VMEM (constant index map); slice the k-tile.
            start = pl.multiple_of(k * tk, tk)
            f = fts_ref[pl.ds(start, tk), :]
        else:
            f = fts_ref[...]

        partial = jnp.dot(a, f, preferred_element_type=jnp.float32)

        # Accumulate directly into the (f32, k-resident) output block: no scratch.
        @pl.when(k == 0)
        def _():
            out_ref[...] = partial

        @pl.when(k > 0)
        def _():
            out_ref[...] = out_ref[...] + partial

    return kernel


# ----------------------------- wrapper ---------------------------------------


def _round_up(x, m):
    return ((x + m - 1) // m) * m


def _round_down(x, m):
    return (x // m) * m


def _vmem_budget_bytes():
    """Generation-aware scoped-VMEM budget: ~48 MiB on v7x (64 MiB phys), 64 MiB on v5e/v6e."""
    phys = 64 << 20
    try:
        info = pltpu.get_tpu_info()
        phys = int(getattr(info, "vmem_capacity_bytes", phys))
    except Exception:
        pass
    return int(min((phys * 3) // 4, 64 << 20))


def sugrl_gcn_forward(
    seq,
    adj,
    weight,
    bias=None,
    *,
    tm=512,                 # output row tile (multiple of 8)
    tk=2048,                # contraction (adj column) tile (multiple of 256)
    small_n_threshold=1024, # grid-less fused path below this N
    force_stream_fts=False, # testing hook: force the non-resident fts fallback
):
    """seq: (1, N, C), adj: (N, N) dense, weight: (dim_out, C) -> (1, N, dim_out) f32.

    adj is consumed in the caller's dtype (no wrapper-side cast / pad of the N^2
    matrix); pass a bf16 adjacency if it is stored/reused in bf16.
    """
    assert seq.ndim == 3 and seq.shape[0] == 1
    _, N, C = seq.shape
    dim_out, C_w = weight.shape
    assert C_w == C
    assert adj.shape == (N, N)
    assert tm % 8 == 0 and tk % 256 == 0

    seq2d = seq[0]                                     # (N, C)
    wT = jnp.transpose(weight).astype(seq2d.dtype)     # (C, dim_out): no in-kernel .T
    mm_dtype = adj.dtype                               # spmm operand dtype (match adj)
    budget = _vmem_budget_bytes()

    if N <= small_n_threshold or N < 256:
        # Small-graph path: single grid-less call, full blocks resident in VMEM.
        out2d = pl.pallas_call(
            _fused_small_kernel,
            out_shape=jax.ShapeDtypeStruct((N, dim_out), jnp.float32),
            compiler_params=pltpu.CompilerParams(vmem_limit_bytes=budget),
        )(seq2d, wT, adj)
    else:
        # ---- tiled path -----------------------------------------------------
        tk_eff = min(tk, max(256, _round_down(N, 256)))
        tm_eff = min(tm, max(8, _round_down(N, 8)))
        grid_i = pl.cdiv(N, tm_eff)
        grid_k = pl.cdiv(N, tk_eff)
        k_pad = grid_k * tk_eff

        # Stage 1: fts = seq @ W.T over k_pad rows.  Only the tiny (N, C) seq is
        # zero-padded, so fts rows >= N are exactly zero.
        pad = k_pad - N
        seq_p = jnp.pad(seq2d, ((0, pad), (0, 0))) if pad else seq2d
        tm1 = min(256, tk_eff)  # divides k_pad (tk_eff is a multiple of 256)
        fts = pl.pallas_call(
            _project_kernel,
            out_shape=jax.ShapeDtypeStruct((k_pad, dim_out), mm_dtype),
            grid_spec=pltpu.PrefetchScalarGridSpec(
                num_scalar_prefetch=0,
                grid=(k_pad // tm1,),
                in_specs=[
                    pl.BlockSpec((tm1, C), lambda i: (i, 0)),
                    pl.BlockSpec((C, dim_out), lambda i: (0, 0)),  # resident, tiny
                ],
                out_specs=pl.BlockSpec((tm1, dim_out), lambda i: (i, 0)),
            ),
            compiler_params=pltpu.CompilerParams(
                dimension_semantics=("parallel",),
                vmem_limit_bytes=budget,
            ),
        )(seq_p, wT)

        # Stage 2: out = adj @ fts.
        item = jnp.dtype(mm_dtype).itemsize
        fts_bytes = k_pad * dim_out * item
        adj_tile_bytes = tm_eff * tk_eff * item
        out_tile_bytes = tm_eff * dim_out * 4
        fts_resident = (not force_stream_fts) and (
            2 * fts_bytes + 2 * adj_tile_bytes + 2 * out_tile_bytes <= budget
        )

        if fts_resident:
            # DMA'd once (constant index map), stays in VMEM for the whole grid.
            fts_spec = pl.BlockSpec((k_pad, dim_out), lambda i, k: (0, 0))
        else:
            fts_spec = pl.BlockSpec((tk_eff, dim_out), lambda i, k: (k, 0))

        mask_cols = (N % tk_eff) != 0
        kernel = _make_spmm_kernel(N, tk_eff, mask_cols, fts_resident)

        out2d = pl.pallas_call(
            kernel,
            out_shape=jax.ShapeDtypeStruct((N, dim_out), jnp.float32),
            grid_spec=pltpu.PrefetchScalarGridSpec(
                num_scalar_prefetch=0,
                grid=(grid_i, grid_k),
                in_specs=[
                    pl.BlockSpec((tm_eff, tk_eff), lambda i, k: (i, k)),
                    fts_spec,
                ],
                out_specs=pl.BlockSpec((tm_eff, dim_out), lambda i, k: (i, 0)),
            ),
            compiler_params=pltpu.CompilerParams(
                dimension_semantics=("parallel", "arbitrary"),
                vmem_limit_bytes=budget,
            ),
        )(adj, fts)

    if bias is not None:
        out2d = out2d + bias.astype(out2d.dtype)

    # TODO(synk): self.act (PReLU) is constructed in the module but never applied
    # in forward(), so it is intentionally not implemented here.
    return out2d[None, :, :]  # torch.unsqueeze(..., 0)


# ----------------------------- test harness ----------------------------------


def xavier_uniform(key, shape, dtype=jnp.float32):
    fan_out, fan_in = shape
    limit = np.sqrt(6.0 / (fan_in + fan_out))
    return jax.random.uniform(key, shape, dtype=dtype, minval=-limit, maxval=limit)


def _make_adj(key, n):
    raw = (jax.random.uniform(key, (n, n)) > 0.9).astype(jnp.float32)
    raw = raw + jnp.eye(n, dtype=jnp.float32)
    return raw / jnp.sum(raw, axis=1, keepdims=True)


if __name__ == "__main__":
    key = jax.random.PRNGKey(0)
    k_w, k_seq, k_adj, k_seq2, k_adj2 = jax.random.split(key, 5)

    in_channels = 32
    dim_out = 128

    weight = xavier_uniform(k_w, (dim_out, in_channels))
    w64 = np.asarray(weight, np.float64)

    # --- 1) small-graph fused path (grid-less), float32 ---
    N = 16
    seq = jax.random.normal(k_seq, (1, N, in_channels), dtype=jnp.float32)
    adj = _make_adj(k_adj, N)
    out = jax.block_until_ready(sugrl_gcn_forward(seq, adj, weight))
    ref = (np.asarray(adj, np.float64)
           @ (np.asarray(seq[0], np.float64) @ w64.T))[None]
    np.testing.assert_allclose(np.asarray(out), ref, rtol=1e-5, atol=1e-5)
    assert out.shape == (1, N, dim_out)

    # --- 2) tiled path, default tiles: ragged rows/cols, resident fts, 2 k-tiles ---
    N2 = 1300  # > small_n_threshold; 1300 % 1280 != 0 exercises the column mask
    seq2 = jax.random.normal(k_seq2, (1, N2, in_channels), dtype=jnp.float32)
    adj2 = _make_adj(k_adj2, N2)
    out2 = jax.block_until_ready(sugrl_gcn_forward(seq2, adj2, weight))
    ref2 = (np.asarray(adj2, np.float64)
            @ (np.asarray(seq2[0], np.float64) @ w64.T))[None]
    np.testing.assert_allclose(np.asarray(out2), ref2, rtol=1e-3, atol=1e-4)
    assert out2.shape == (1, N2, dim_out)

    # --- 3) tiled path, streamed-fts fallback (large-N code path) ---
    out3 = jax.block_until_ready(
        sugrl_gcn_forward(seq2, adj2, weight, force_stream_fts=True)
    )
    np.testing.assert_allclose(np.asarray(out3), ref2, rtol=1e-3, atol=1e-4)

    # --- 4) tiled path with explicit smaller tiles (multi k-tile accumulation) ---
    out4 = jax.block_until_ready(
        sugrl_gcn_forward(seq2, adj2, weight, tm=256, tk=512, small_n_threshold=256)
    )
    np.testing.assert_allclose(np.asarray(out4), ref2, rtol=1e-3, atol=1e-4)

    # --- 5) caller-provided bf16 adjacency (adj is NOT cast in the wrapper) ---
    adj2_bf16 = adj2.astype(jnp.bfloat16)  # stored in bf16 by the caller
    out5 = jax.block_until_ready(sugrl_gcn_forward(seq2, adj2_bf16, weight))
    np.testing.assert_allclose(np.asarray(out5), ref2, rtol=5e-2, atol=5e-2)

    print("KERNEL_OK")
</pallas_src>

<mosaic_0001>
module attributes {stable_mosaic.version = 11 : i64} {
  func.func @_fused_small_kernel(%arg0: memref<16x32xf32, #tpu.memory_space<vmem>>, %arg1: memref<32x128xf32, #tpu.memory_space<vmem>>, %arg2: memref<16x16xf32, #tpu.memory_space<vmem>>, %arg3: memref<16x128xf32, #tpu.memory_space<vmem>>) attributes {dimension_semantics = [], scalar_prefetch = 0 : i64, scratch_operands = 0 : i64, tpu.core_type = #tpu.core_type<tc>} {
    %c0 = arith.constant 0 : index
    %c0_0 = arith.constant 0 : index
    %0 = vector.load %arg0[%c0, %c0_0] : memref<16x32xf32, #tpu.memory_space<vmem>>, vector<16x32xf32>
    %c0_1 = arith.constant 0 : index
    %c0_2 = arith.constant 0 : index
    %1 = vector.load %arg1[%c0_1, %c0_2] : memref<32x128xf32, #tpu.memory_space<vmem>>, vector<32x128xf32>
    %cst = arith.constant dense<0.000000e+00> : vector<16x128xf32>
    %2 = tpu.matmul %0, %1, %cst {dimension_numbers = #tpu.dot_dimension_numbers<[1], [0], [0], [1], [0, 0, 1, 1], [], []>} : vector<16x32xf32>, vector<32x128xf32>, vector<16x128xf32> -> vector<16x128xf32>
    %c0_3 = arith.constant 0 : index
    %c0_4 = arith.constant 0 : index
    %3 = vector.load %arg2[%c0_3, %c0_4] : memref<16x16xf32, #tpu.memory_space<vmem>>, vector<16x16xf32>
    %cst_5 = arith.constant dense<0.000000e+00> : vector<16x128xf32>
    %4 = tpu.matmul %3, %2, %cst_5 {dimension_numbers = #tpu.dot_dimension_numbers<[1], [0], [0], [1], [0, 0, 1, 1], [], []>} : vector<16x16xf32>, vector<16x128xf32>, vector<16x128xf32> -> vector<16x128xf32>
    %c0_6 = arith.constant 0 : index
    %c0_7 = arith.constant 0 : index
    %5 = vector.load %arg3[%c0_6, %c0_7] : memref<16x128xf32, #tpu.memory_space<vmem>>, vector<16x128xf32>
    tpu.vector_store %arg3[%c0_6, %c0_7], %4 {strides = array<i32>} : memref<16x128xf32, #tpu.memory_space<vmem>>, vector<16x128xf32>,
    return
  }
}

</mosaic_0001>

<bundles_post_ra>
// kernel: tpu_custom_call.1
= control target key start
LH: loop header
LB: loop body
LE: loop exit
PB: predicated region body
PF: predicated region fallthrough
CT: control target
= control target key end

     0   :  { %8 = vsyncpa [#allocation3], 0  ;;  %s485_s0 = inlined_call_operand.hbm [shape: f32[16,32], index: 0, kind: input, shape index: {}]   ;;  %s486_s1 = inlined_call_operand.hbm [shape: f32[32,128], index: 1, kind: input, shape index: {}]   ;;  %s487_s2 = inlined_call_operand.hbm [shape: f32[16,16], index: 2, kind: input, shape index: {}]   ;;  %s488_s3 = inlined_call_operand.hbm [shape: f32[16,128], index: 3, kind: output, shape index: {}]  }
   0x1   :  { %9 = vsyncpa [#allocation6], 0 }
   0x2   :  { %10 = vsyncpa [#allocation4], 0  ;;  %s392_s12 = smov [#allocation5]   ;;  %s393_s14 = smov [#allocation2]  }
   0x3   :  { %s28_s13 = sshll.u32 %s392_s12, 4  ;;  %s16_s15 = sshll.u32 %s393_s14, 4  ;;  %s29_s13 = int_to_ptr.vmem [resolvable:$true] %s28_s13  ;;  %s418_s15 = int_to_ptr.vmem [resolvable:$true] %s16_s15 }
   0x4   :  { %s298_s18 = scalar_lea.hbm %s486_s1, 512 }
   0x5   :  { %p299_p0 = scmp.ne.s32.totalorder %s486_s1, %s298_s18  ;;  %p302_p1 = scmp.lt.u32.totalorder %s298_s18, %s486_s1 }
   0x7   :  { %p304_p2 = pnand %p302_p1, %p299_p0 }
   0x9   :  { %307 = shalt.err (!%p304_p2)
}
   0xa   :  { %s308_s23 = scalar_lea.vmem %s29_s13, 512  ;;  %p313_p4 = scmp.lt.s32.totalorder %s29_s13, %s29_s13 }
   0xb   :  { %p309_p3 = scmp.ne.s32.totalorder %s29_s13, %s308_s23  ;;  %p314_p5 = scmp.lt.s32.totalorder %s308_s23, %s308_s23 }
   0xd   :  { %p315_p6 = por %p314_p5, %p313_p4 }
   0xf   :  { %p316_p7 = pnand %p315_p6, %p309_p3 }
  0x11   :  { %319 = shalt.err (!%p316_p7)
}
  0x12   :  { %s394_s24 = smov 128   ;;  %s395_s25 = smov 8  }
  0x13   :  { %34 = dma.hbm_to_vmem [thread:$0]  %s486_s1, 512, %s29_s13, [#allocation6], %s394_s24, %s394_s24, %s395_s25  }
  0x14   :  { %s320_s30 = scalar_lea.hbm %s485_s0, 256 }
  0x15   :  { %p321_p8 = scmp.ne.s32.totalorder %s485_s0, %s320_s30  ;;  %p324_p9 = scmp.lt.u32.totalorder %s320_s30, %s485_s0 }
  0x17   :  { %p326_p10 = pnand %p324_p9, %p321_p8 }
  0x19   :  { %329 = shalt.err (!%p326_p10)
}
  0x1a   :  { %s330_s8 = scalar_lea.vmem %s418_s15, 256  ;;  %p335_p12 = scmp.lt.s32.totalorder %s418_s15, %s418_s15 }
  0x1b   :  { %p331_p11 = scmp.ne.s32.totalorder %s418_s15, %s330_s8  ;;  %p336_p13 = scmp.lt.s32.totalorder %s330_s8, %s330_s8 }
  0x1d   :  { %p337_p0 = por %p336_p13, %p335_p12 }
  0x1f   :  { %p338_p1 = pnand %p337_p0, %p331_p11 }
  0x21   :  { %341 = shalt.err (!%p338_p1)
}
  0x22   :  { %22 = dma.hbm_to_vmem [thread:$0]  %s485_s0, 256, %s418_s15, [#allocation3], %s394_s24, %s394_s24, %s395_s25  }
  0x23   :  { %s396_s10 = smov [#allocation7]   ;;  %s342_s14 = scalar_lea.hbm %s487_s2, 256 }
  0x24   :  { %s40_s11 = sshll.u32 %s396_s10, 4  ;;  %p343_p2 = scmp.ne.s32.totalorder %s487_s2, %s342_s14  ;;  %s41_s11 = int_to_ptr.vmem [resolvable:$true] %s40_s11 }
  0x25   :  { %p346_p3 = scmp.lt.u32.totalorder %s342_s14, %s487_s2 }
  0x27   :  { %p348_p4 = pnand %p346_p3, %p343_p2 }
  0x29   :  { %351 = shalt.err (!%p348_p4)
}
  0x2a   :  { %s352_s20 = scalar_lea.vmem %s41_s11, 256  ;;  %p357_p6 = scmp.lt.s32.totalorder %s41_s11, %s41_s11 }
  0x2b   :  { %p353_p5 = scmp.ne.s32.totalorder %s41_s11, %s352_s20  ;;  %p358_p7 = scmp.lt.s32.totalorder %s352_s20, %s352_s20 }
  0x2d   :  { %p359_p8 = por %p358_p7, %p357_p6 }
  0x2f   :  { %p360_p9 = pnand %p359_p8, %p353_p5 }
  0x31   :  { %363 = shalt.err (!%p360_p9)
}
  0x32   :  { %46 = dma.hbm_to_vmem [thread:$0]  %s487_s2, 256, %s41_s11, [#allocation6], %s394_s24, %s394_s24, %s395_s25  }
  0x33   :  { %386 = dma.done.wait [#allocation3], 256  }
  0x34   :  { %387 = vsyncadd [#allocation3], 4294967040 }
  0x35   :  { %388 = dma.done.wait [#allocation6], 768  }
  0x36   :  { %389 = vsyncadd [#allocation6], 4294966528  ;;  %vm62_vm0 = vcmask 261120   ;;  %v58_v0 = vld [vmem:[#allocation5] sm:$0xff]  ;;  %v59_v1 = vld [vmem:[#allocation5 + $0x8] sm:$0xff]  ;;  %vm146_vm1 = vcmask 130048  }
  0x37   :  { %v60_v2 = vld [vmem:[#allocation5 + $0x10] sm:$0xff]  ;;  %v280_v3 = vpack.c.bf16 %v59_v1, %v58_v0  ;;  %v61_v4 = vld [vmem:[#allocation5 + $0x18] sm:$0xff]  ;;  %v144_v8 = vld [vmem:[#allocation7] sm:$0xff]  ;;  %s397_s2 = smov [#allocation8]  }
  0x38   :  { %v56_v5 = vld [vmem:[#allocation2] sm:$0xff]  ;;  %v284_v6 = vpack.c.bf16 %v61_v4, %v60_v2  ;;  %v57_v7 = vld [vmem:[#allocation2 + $0x8] sm:$0xff]  ;;  %277 = vmatprep.mubr.msk.f32.mxu1 %vm146_vm1, %v144_v8  ;;  %v145_v12 = vld [vmem:[#allocation7 + $0x8] sm:$0xff]  ;;  %s235_s21 = sshll.u32 %s397_s2, 4  ;;  %s236_s21 = int_to_ptr.vmem [resolvable:$true] %s235_s21 }
  0x39   :  { %270 = vmatprep.mubr.msk.f32.mxu0 %vm62_vm0, %v56_v5  ;;  %281 = vmatprep.subr.bf16.mxu0 %v280_v3  ;;  %s364_s22 = scalar_lea.vmem %s236_s21, 256  ;;  %p369_p11 = scmp.lt.s32.totalorder %s236_s21, %s236_s21 }
  0x3a   :  { %283 = vmatpush3.bf16.msra.mxu0 %v280_v3  ;;  %p365_p10 = scmp.ne.s32.totalorder %s236_s21, %s364_s22  ;;  %p370_p12 = scmp.lt.s32.totalorder %s364_s22, %s364_s22 }
  0x3b   :  { %285 = vmatprep.subr.bf16.mxu0 %v284_v6 }
  0x3c   :  { %p371_p13 = por %p370_p12, %p369_p11 }
  0x3e   :  { %287 = vmatpush3.bf16.msra.mxu0 %v284_v6  ;;  %p372_p0 = pnand %p371_p13, %p365_p10 }
  0x41   :  { %271 = vmatmul.mubr.msk.f32.vlgmr.msra.gmra.mrb[0].mxu0 %vm62_vm0, %v57_v7 }
 0x114   :  { %v272_v9 = vpop.f32.mrb[0].mxu0 }
 0x115   :  { %v135_v10 = vpop.f32.mrb[1].mxu0 }
 0x116   :  { %v288_v11 = vpack.c.bf16 %v272_v9, %v135_v10 }
 0x118   :  { %289 = vmatprep.subr.bf16.mxu1 %v288_v11 }
 0x119   :  { %291 = vmatpush3.bf16.msra.mxu1 %v288_v11 }
 0x11c   :  { %278 = vmatmul.mubr.msk.f32.vlgmr.msra.gmra.mrb[0].mxu1 %vm146_vm1, %v145_v12 }
 0x1ef   :  { %v279_v13 = vpop.f32.mrb[0].mxu1 }
 0x1f0   :  { %229 = vst [vmem:[#allocation8 + $0x8] sm:$0xff] %v279_v13  ;;  %v219_v14 = vpop.f32.mrb[1].mxu1 }
 0x1f1   :  { %228 = vst [vmem:[#allocation8] sm:$0xff] %v219_v14 }
 0x1f2   :  { %375 = shalt.err (!%p372_p0)
}
 0x1f3   :  { %s376_s27 = scalar_lea.hbm %s488_s3, 256 }
 0x1f4   :  { %p377_p1 = scmp.ne.s32.totalorder %s488_s3, %s376_s27  ;;  %p380_p2 = scmp.lt.u32.totalorder %s376_s27, %s488_s3 }
 0x1f6   :  { %p382_p3 = pnand %p380_p2, %p377_p1 }
 0x1f8   :  { %385 = shalt.err (!%p382_p3)
}
 0x1f9   :  { %241 = dma.vmem_to_hbm [thread:$0]  %s236_s21, 256, %s488_s3, [#allocation4], %s394_s24, %s394_s24, %s395_s25  }
 0x1fa   :  { %390 = dma.done.wait [#allocation4], 256  }
 0x1fb   :  { %391 = vsyncadd [#allocation4], 4294967040 }
 0x1fc   :  { %245 = vsyncpa [#allocation3], 1 }
 0x1fd   :  { %246 = vsyncpa [#allocation6], 1 }
 0x1fe   :  { %247 = vsyncpa [#allocation4], 1 }

</bundles_post_ra>
